<compile_context>
chip_gen: v6e
topology: v6e:2x2x1
jax: 0.10.0
libtpu: 0.0.40
codegen_flags: <defaults>
</compile_context>

<pallas_src>
import jax
import jax.numpy as jnp
from jax.experimental import pallas as pl
from jax.experimental.pallas import tpu as pltpu


# ----------------------------------------------------------------------------
# Pallas kernel: fused embedding-gather + 2-layer MLP LM head
#   logits = relu(onehot(tok) @ E @ W1 + b1) @ W2 + b2
# ----------------------------------------------------------------------------
def lm_forward_kernel(tok_ref, emb_ref, w1_ref, b1_ref, w2_ref, b2_ref, o_ref):
    # tok_ref: (tm, 1)  int32      (one tile of flattened token ids)
    # emb_ref: (V, D)   bf16       (resident across grid steps)
    # w1_ref : (D, H)   bf16,  b1_ref: (1, H) f32
    # w2_ref : (H, V)   bf16,  b2_ref: (1, V) f32
    # o_ref  : (tm, V)  f32        (logits tile)
    tok = tok_ref[...]                                           # (tm, 1) int32
    tm = tok.shape[0]
    vocab = emb_ref.shape[0]

    # Fused embedding gather via one-hot matmul on the MXU (bf16 -> f32 acc).
    lane_ids = jax.lax.broadcasted_iota(jnp.int32, (tm, vocab), 1)
    one_hot = (lane_ids == tok).astype(jnp.bfloat16)             # (tm, V)
    x_emb = jnp.dot(one_hot, emb_ref[...],
                    preferred_element_type=jnp.float32)          # (tm, D) f32

    # Hidden layer: bf16 operands, f32 accumulation; bias + ReLU in f32 (VPU).
    h = jnp.dot(x_emb.astype(jnp.bfloat16), w1_ref[...],
                preferred_element_type=jnp.float32)              # (tm, H) f32
    h = jnp.maximum(h + b1_ref[...], 0.0)

    # Output projection.
    out = jnp.dot(h.astype(jnp.bfloat16), w2_ref[...],
                  preferred_element_type=jnp.float32)            # (tm, V) f32
    o_ref[...] = out + b2_ref[...]


def lm_forward_pallas(tokens_flat, emb, w1, b1, w2, b2, *, tile_m=128):
    """tokens_flat: (M,) int32.  emb/w1/w2 bf16, b1/b2 f32.  Returns (M, V) f32."""
    M = tokens_flat.shape[0]
    V, D = emb.shape
    H = w1.shape[1]

    # Pad M up to a multiple of tile_m (pad token id 0; rows sliced off below).
    num_tiles = pl.cdiv(M, tile_m)
    M_pad = num_tiles * tile_m
    tok = tokens_flat.astype(jnp.int32)
    if M_pad != M:
        tok = jnp.pad(tok, (0, M_pad - M))
    tok2d = tok.reshape(M_pad, 1)

    flops = 2 * M_pad * (V * D + D * H + H * V)
    bytes_accessed = (tok2d.size * 4 + emb.size * 2 + w1.size * 2 + b1.size * 4
                      + w2.size * 2 + b2.size * 4 + M_pad * V * 4)

    out = pl.pallas_call(
        lm_forward_kernel,
        out_shape=jax.ShapeDtypeStruct((M_pad, V), jnp.float32),
        grid=(num_tiles,),
        in_specs=[
            pl.BlockSpec((tile_m, 1), lambda i: (i, 0)),   # token tile (pipelined)
            pl.BlockSpec((V, D), lambda i: (0, 0)),        # emb  (resident)
            pl.BlockSpec((D, H), lambda i: (0, 0)),        # w1   (resident)
            pl.BlockSpec((1, H), lambda i: (0, 0)),        # b1   (resident)
            pl.BlockSpec((H, V), lambda i: (0, 0)),        # w2   (resident)
            pl.BlockSpec((1, V), lambda i: (0, 0)),        # b2   (resident)
        ],
        out_specs=pl.BlockSpec((tile_m, V), lambda i: (i, 0)),
        compiler_params=pltpu.CompilerParams(
            dimension_semantics=("parallel",)),
        cost_estimate=pl.CostEstimate(
            flops=flops, transcendentals=0, bytes_accessed=bytes_accessed),
    )(tok2d, emb, w1, b1, w2, b2)
    return out[:M]


# ----------------------------------------------------------------------------
# Synthetic `net`: Embedding(V, D) -> Linear(D, H) -> ReLU -> Linear(H, V)
# (weights in bf16 for the MXU, biases f32; all shapes lane/MXU aligned)
# ----------------------------------------------------------------------------
class SimpleLMNet:
    def __init__(self, vocab_size=256, dim=128, hidden=128, key=None):
        if key is None:
            key = jax.random.PRNGKey(0)
        k_emb, k_w1, k_b1, k_w2, k_b2 = jax.random.split(key, 5)
        self.vocab_size = vocab_size
        self.dim = dim
        self.hidden = hidden
        scale_e = 1.0 / jnp.sqrt(dim)
        scale_1 = 1.0 / jnp.sqrt(dim)
        scale_2 = 1.0 / jnp.sqrt(hidden)
        self.emb = (jax.random.normal(k_emb, (vocab_size, dim), jnp.float32)
                    * scale_e).astype(jnp.bfloat16)
        self.w1 = (jax.random.normal(k_w1, (dim, hidden), jnp.float32)
                   * scale_1).astype(jnp.bfloat16)
        self.b1 = jax.random.normal(k_b1, (1, hidden), jnp.float32) * 0.01
        self.w2 = (jax.random.normal(k_w2, (hidden, vocab_size), jnp.float32)
                   * scale_2).astype(jnp.bfloat16)
        self.b2 = jax.random.normal(k_b2, (1, vocab_size), jnp.float32) * 0.01

    def __call__(self, x):
        # x: (B, T) int32 token ids  ->  logits (B, T, V) float32
        B, T = x.shape
        logits_flat = lm_forward_pallas(
            x.reshape(-1), self.emb, self.w1, self.b1, self.w2, self.b2)
        return logits_flat.reshape(B, T, self.vocab_size)


# ----------------------------------------------------------------------------
# AutoregressiveWrapper: forward(x) == net(x)
# ----------------------------------------------------------------------------
class AutoregressiveWrapper:
    def __init__(self, net, max_seq_len=512, pad_value=0):
        self.pad_value = pad_value
        self.net = net
        self.max_seq_len = max_seq_len

    # TODO(synk): generate() is a host-side autoregressive sampling loop
    # (top-k filter + Gumbel argmax per step); it is not part of forward()
    # and is not implemented as a kernel here.

    def forward(self, x, **kwargs):
        return self.net(x, **kwargs)

    __call__ = forward


if __name__ == "__main__":
    key = jax.random.PRNGKey(0)
    k_tok, k_params = jax.random.split(key)

    B, T = 2, 128                 # M = B*T = 256 -> two 128-row tiles
    vocab, dim, hidden = 256, 128, 128

    net = SimpleLMNet(vocab_size=vocab, dim=dim, hidden=hidden, key=k_params)
    model = AutoregressiveWrapper(net, max_seq_len=512, pad_value=0)

    tokens = jax.random.randint(k_tok, (B, T), 0, vocab, dtype=jnp.int32)

    logits = model(tokens)
    logits = jax.block_until_ready(logits)

    assert logits.shape == (B, T, vocab), logits.shape
    assert logits.dtype == jnp.float32
    assert bool(jnp.all(jnp.isfinite(logits)))

    # Pure-JAX reference with identical numerics (bf16 operands, f32 accum).
    one_hot = jax.nn.one_hot(tokens.reshape(-1), vocab, dtype=jnp.bfloat16)
    x_emb = jnp.dot(one_hot, net.emb, preferred_element_type=jnp.float32)
    h = jnp.maximum(
        jnp.dot(x_emb.astype(jnp.bfloat16), net.w1,
                preferred_element_type=jnp.float32) + net.b1, 0.0)
    ref = (jnp.dot(h.astype(jnp.bfloat16), net.w2,
                   preferred_element_type=jnp.float32) + net.b2)
    ref = ref.reshape(B, T, vocab)
    assert bool(jnp.allclose(logits, ref, atol=1e-2, rtol=1e-2)), (
        float(jnp.max(jnp.abs(logits - ref))))

    print("KERNEL_OK")
</pallas_src>

<mosaic_0001>
module attributes {stable_mosaic.version = 11 : i64} {
  func.func @lm_forward_kernel(%arg0: i32, %arg1: memref<128x1xi32, #tpu.memory_space<vmem>>, %arg2: memref<256x128xbf16, #tpu.memory_space<vmem>>, %arg3: memref<128x128xbf16, #tpu.memory_space<vmem>>, %arg4: memref<1x128xf32, #tpu.memory_space<vmem>>, %arg5: memref<128x256xbf16, #tpu.memory_space<vmem>>, %arg6: memref<1x256xf32, #tpu.memory_space<vmem>>, %arg7: memref<128x256xf32, #tpu.memory_space<vmem>>) attributes {dimension_semantics = [#tpu.dimension_semantics<parallel>], iteration_bounds = array<i64: 2>, scalar_prefetch = 0 : i64, scratch_operands = 0 : i64, tpu.core_type = #tpu.core_type<tc>, window_params = [{transform_indices = @transform_0, window_bounds = array<i64: 128, 1>}, {pipeline_mode = #tpu.pipeline_mode<synchronous>, transform_indices = @transform_1, window_bounds = array<i64: 256, 128>}, {pipeline_mode = #tpu.pipeline_mode<synchronous>, transform_indices = @transform_2, window_bounds = array<i64: 128, 128>}, {pipeline_mode = #tpu.pipeline_mode<synchronous>, transform_indices = @transform_3, window_bounds = array<i64: 1, 128>}, {pipeline_mode = #tpu.pipeline_mode<synchronous>, transform_indices = @transform_4, window_bounds = array<i64: 128, 256>}, {pipeline_mode = #tpu.pipeline_mode<synchronous>, transform_indices = @transform_5, window_bounds = array<i64: 1, 256>}, {transform_indices = @transform_6, window_bounds = array<i64: 128, 256>}]} {
    %c0 = arith.constant 0 : index
    %c0_0 = arith.constant 0 : index
    %0 = vector.load %arg1[%c0, %c0_0] : memref<128x1xi32, #tpu.memory_space<vmem>>, vector<128x1xi32>
    %1 = tpu.iota {dimensions = array<i32: 1>} : vector<128x256xi32>
    %2 = vector.broadcast %0 : vector<128x1xi32> to vector<128x256xi32>
    %3 = arith.cmpi eq, %1, %2 : vector<128x256xi32>
    %4 = arith.extui %3 : vector<128x256xi1> to vector<128x256xi32>
    %5 = arith.sitofp %4 : vector<128x256xi32> to vector<128x256xf32>
    %6 = arith.truncf %5 : vector<128x256xf32> to vector<128x256xbf16>
    %c0_1 = arith.constant 0 : index
    %c0_2 = arith.constant 0 : index
    %7 = vector.load %arg2[%c0_1, %c0_2] : memref<256x128xbf16, #tpu.memory_space<vmem>>, vector<256x128xbf16>
    %cst = arith.constant dense<0.000000e+00> : vector<128x128xf32>
    %8 = tpu.matmul %6, %7, %cst {dimension_numbers = #tpu.dot_dimension_numbers<[1], [0], [0], [1], [0, 0, 1, 1], [], []>} : vector<128x256xbf16>, vector<256x128xbf16>, vector<128x128xf32> -> vector<128x128xf32>
    %9 = arith.truncf %8 : vector<128x128xf32> to vector<128x128xbf16>
    %c0_3 = arith.constant 0 : index
    %c0_4 = arith.constant 0 : index
    %10 = vector.load %arg3[%c0_3, %c0_4] : memref<128x128xbf16, #tpu.memory_space<vmem>>, vector<128x128xbf16>
    %cst_5 = arith.constant dense<0.000000e+00> : vector<128x128xf32>
    %11 = tpu.matmul %9, %10, %cst_5 {dimension_numbers = #tpu.dot_dimension_numbers<[1], [0], [0], [1], [0, 0, 1, 1], [], []>} : vector<128x128xbf16>, vector<128x128xbf16>, vector<128x128xf32> -> vector<128x128xf32>
    %c0_6 = arith.constant 0 : index
    %c0_7 = arith.constant 0 : index
    %12 = vector.load %arg4[%c0_6, %c0_7] : memref<1x128xf32, #tpu.memory_space<vmem>>, vector<1x128xf32>
    %13 = vector.broadcast %12 : vector<1x128xf32> to vector<128x128xf32>
    %14 = arith.addf %11, %13 : vector<128x128xf32>
    %cst_8 = arith.constant 0.000000e+00 : f32
    %15 = vector.broadcast %cst_8 : f32 to vector<128x128xf32>
    %16 = arith.maximumf %14, %15 : vector<128x128xf32>
    %17 = arith.truncf %16 : vector<128x128xf32> to vector<128x128xbf16>
    %c0_9 = arith.constant 0 : index
    %c0_10 = arith.constant 0 : index
    %18 = vector.load %arg5[%c0_9, %c0_10] : memref<128x256xbf16, #tpu.memory_space<vmem>>, vector<128x256xbf16>
    %cst_11 = arith.constant dense<0.000000e+00> : vector<128x256xf32>
    %19 = tpu.matmul %17, %18, %cst_11 {dimension_numbers = #tpu.dot_dimension_numbers<[1], [0], [0], [1], [0, 0, 1, 1], [], []>} : vector<128x128xbf16>, vector<128x256xbf16>, vector<128x256xf32> -> vector<128x256xf32>
    %c0_12 = arith.constant 0 : index
    %c0_13 = arith.constant 0 : index
    %20 = vector.load %arg6[%c0_12, %c0_13] : memref<1x256xf32, #tpu.memory_space<vmem>>, vector<1x256xf32>
    %21 = vector.broadcast %20 : vector<1x256xf32> to vector<128x256xf32>
    %22 = arith.addf %19, %21 : vector<128x256xf32>
    %c0_14 = arith.constant 0 : index
    %c0_15 = arith.constant 0 : index
    %23 = vector.load %arg7[%c0_14, %c0_15] : memref<128x256xf32, #tpu.memory_space<vmem>>, vector<128x256xf32>
    tpu.vector_store %arg7[%c0_14, %c0_15], %22 {strides = array<i32>} : memref<128x256xf32, #tpu.memory_space<vmem>>, vector<128x256xf32>,
    return
  }
  func.func @transform_0(%arg0: i32) -> (i32, i32) {
    %c0_i32 = arith.constant 0 : i32
    %c0_i32_0 = arith.constant 0 : i32
    return %arg0, %c0_i32 : i32, i32
  }
  func.func @transform_1(%arg0: i32) -> (i32, i32) {
    %c0_i32 = arith.constant 0 : i32
    %c0_i32_0 = arith.constant 0 : i32
    %c0_i32_1 = arith.constant 0 : i32
    return %c0_i32, %c0_i32_0 : i32, i32
  }
  func.func @transform_2(%arg0: i32) -> (i32, i32) {
    %c0_i32 = arith.constant 0 : i32
    %c0_i32_0 = arith.constant 0 : i32
    %c0_i32_1 = arith.constant 0 : i32
    return %c0_i32, %c0_i32_0 : i32, i32
  }
  func.func @transform_3(%arg0: i32) -> (i32, i32) {
    %c0_i32 = arith.constant 0 : i32
    %c0_i32_0 = arith.constant 0 : i32
    %c0_i32_1 = arith.constant 0 : i32
    return %c0_i32, %c0_i32_0 : i32, i32
  }
  func.func @transform_4(%arg0: i32) -> (i32, i32) {
    %c0_i32 = arith.constant 0 : i32
    %c0_i32_0 = arith.constant 0 : i32
    %c0_i32_1 = arith.constant 0 : i32
    return %c0_i32, %c0_i32_0 : i32, i32
  }
  func.func @transform_5(%arg0: i32) -> (i32, i32) {
    %c0_i32 = arith.constant 0 : i32
    %c0_i32_0 = arith.constant 0 : i32
    %c0_i32_1 = arith.constant 0 : i32
    return %c0_i32, %c0_i32_0 : i32, i32
  }
  func.func @transform_6(%arg0: i32) -> (i32, i32) {
    %c0_i32 = arith.constant 0 : i32
    %c0_i32_0 = arith.constant 0 : i32
    return %arg0, %c0_i32 : i32, i32
  }
}

</mosaic_0001>

<bundles_post_ra>
// kernel: tpu_custom_call.1
= control target key start
LH: loop header
LB: loop body
LE: loop exit
PB: predicated region body
PF: predicated region fallthrough
CT: control target
= control target key end

     0   :  { %11 = vsyncpa [#allocation3], 0  ;;  %s2085_s0 = inlined_call_operand.vmem [shape: s32[256,1], index: 0, kind: input, shape index: {}]   ;;  %s2086_s1 = inlined_call_operand.vmem [shape: bf16[256,128], index: 1, kind: input, shape index: {}]   ;;  %s2087_s2 = inlined_call_operand.hbm [shape: bf16[128,128], index: 2, kind: input, shape index: {}]   ;;  %s2088_s3 = inlined_call_operand.vmem [shape: f32[1,128], index: 3, kind: input, shape index: {}]   ;;  %s2089_s4 = inlined_call_operand.vmem [shape: bf16[128,256], index: 4, kind: input, shape index: {}]   ;;  %s2090_s5 = inlined_call_operand.vmem [shape: f32[1,256], index: 5, kind: input, shape index: {}]   ;;  %s2091_s6 = inlined_call_operand.hbm [shape: f32[256,256], index: 6, kind: output, shape index: {}]  }
   0x1   :  { %12 = vsyncpa [#allocation4], 0 }
   0x2   :  { %14 = vsyncpa [#allocation4 + $0x1], 0  ;;  %s1706_s21 = smov 0   ;;  %s1708_s22 = smov 0  }
   0x3   :  { %s1710_s23 = smov 0   ;;  %s1712_s24 = smov 0  }
   0x4 LB: > { %s1727_s25 = sadd.s32 4294967295, %s1661_s24   ;;  %s1215_s26 = sadd.s32 4294967294, %s1661_s24   ;;  %s1661_s24 = sphi %s1712_s24, %s2099_s24   ;;  %s1657_s23 = sphi %s1710_s23, %s2098_s23   ;;  %s1653_s22 = sphi %s1708_s22, %s2097_s22   ;;  %s1649_s21 = sphi %s1706_s21, %s2096_s21  }
   0x5   : > { %s1731_s27 = sadd.s32 1, %s1661_s24   ;;  %s158_s28 = sadd.s32 1, %s1657_s23 }
   0x6   : > { %s155_s29 = ssub.s32 %s1661_s24, %s1731_s27  ;;  %p168_p0 = scmp.ne.s32.totalorder %s1657_s23, %s1653_s22 }
   0x7   : > { %p156_p1 = scmp.eq.s32.totalorder %s155_s29, 0  ;;  %p169_p2 = scmp.eq.s32.totalorder %s1727_s25, 1 }
   0x8   : > { %p174_p3 = scmp.ne.s32.totalorder %s1653_s22, %s1649_s21  ;;  %p175_p4 = scmp.eq.s32.totalorder %s1215_s26, 1 }
   0x9   : > { %s1742_s30 = scalar_select %p156_p1, %s1657_s23, %s158_s28  }
   0xa   : > { %p1744_p5 = por %p169_p2, %p168_p0  ;;  %p1748_p6 = por %p175_p4, %p174_p3 }
   0xb   : > { %p1216_p7 = scmp.ge.s32.totalorder %s1661_s24, 1  ;;  %p182_p8 = scmp.lt.s32.totalorder %s1661_s24, 3 }
   0xc   : > { %s2093_s8 = scalar_select %p1748_p6, 1, 0 }
   0xd   : > { %p1479_p9 = scmp.eq.s32.totalorder %s1727_s25, 0  ;;  %p1755_p10 = pnand %p1216_p7, %p182_p8 }
   0xe   : > { %s1663_s10 = smov [#allocation2]  }
   0xf   : > { %s197_s11 = sshll.u32 %s1663_s10, 4  ;;  %p1471_p11 = pneg %p1755_p10  ;;  %s198_s11 = int_to_ptr.vmem [resolvable:$true] %s197_s11 }
  0x10   : > { %s1582_s12 = scalar_lea.vmem %s198_s11, 1024  ;;  %p1590_p3 = scmp.lt.s32.totalorder %s198_s11, %s198_s11 }
  0x11   : > { %p1472_p12 = pnand %p1479_p9, %p1471_p11  ;;  %p1583_p0 = scmp.ne.s32.totalorder %s198_s11, %s1582_s12 }
  0x12   : > { %p1591_p4 = scmp.lt.s32.totalorder %s1582_s12, %s1582_s12 }
  0x13   : > { %p1573_p13 = pneg %p1472_p12 }
  0x14   : > { %p1592_p6 = por %p1591_p4, %p1590_p3 }
  0x15   : > { %p1585_p1 = pnand %p1583_p0, %p1573_p13 }
  0x17   : > { %p1586_p2 = pneg %p1585_p1 }
  0x19   : > { %p1593_p7 = pnand %p1592_p6, %p1586_p2 }
  0x1b   : > { %1596 = shalt.err (!%p1593_p7)
}
  0x1c   : > { %s1664_s13 = smov 64   ;;  %s1665_s14 = smov 4  }
  0x1d   : > { %1474 = dma.hbm_to_vmem [thread:$0]  (!%p1472_p12), %s2087_s2, 1024, %s198_s11, [#allocation3], %s1664_s13, %s1664_s13, %s1665_s14  }
  0x1e   : > { %231 = sbr.rel (%p1755_p10) target bundleno = 863 (0x35f), region = 44 }
  0x23   : > { %1640 = dma.done.wait (%p1479_p9), [#allocation3], 1024  }
  0x24   : > { %1642 = vsyncadd (%p1479_p9), [#allocation3], 4294966272  ;;  %s1222_s17 = sshll.u32 %s1727_s25, 4  ;;  %v1666_v0 = vmov 0   ;;  %v1523_v7 = vld [vmem:[%s2086_s1 + $0x78] sm:$0xff]   ;;  %v1525_v10 = vld [vmem:[%s2086_s1 + $0x70] sm:$0xff]   ;;  %v285_v37 = vlaneseq }
  0x25   : > { %1522 = vset.pattern.permute.xlu1 %v1666_v0  ;;  %1521 = vset.pattern.permute.xlu0 %v1666_v0  ;;  %p262_p6 = scmp.lt.s32.totalorder %s1222_s17, 31  ;;  %v1524_v8 = vld [vmem:[%s2086_s1 + $0x38] sm:$0xff]   ;;  %v1526_v12 = vld [vmem:[%s2086_s1 + $0x30] sm:$0xff]   ;;  %v1527_v13 = vld [vmem:[%s2086_s1 + $0x68] sm:$0xff]   ;;  %v1667_v44 = vmov 1.0|1.0  }
  0x26   : > { %1337 = vmatprep.subr.bf16.mxu0 %v1523_v7  ;;  %v1528_v16 = vld [vmem:[%s2086_s1 + $0x28] sm:$0xff]   ;;  %v1529_v17 = vld [vmem:[%s2086_s1 + $0x60] sm:$0xff]   ;;  %v1531_v21 = vld [vmem:[%s2086_s1 + $0x58] sm:$0xff]   ;;  %v1845_v38 = vand.u32 127, %v285_v37  ;;  %s258_s14 = sand.u32 1, %s1653_s22   ;;  %s1336_s19 = sshll.u32 %s1727_s25, 12 }
  0x27   : > { %s2101_s17 = smov (!%p262_p6, %s1222_s17), 31  ;;  %1338 = vmatpush3.bf16.msra.mxu0 %v1524_v8  ;;  %v1530_v20 = vld [vmem:[%s2086_s1 + $0x20] sm:$0xff]   ;;  %v1532_v24 = vld [vmem:[%s2086_s1 + $0x18] sm:$0xff]   ;;  %v1533_v25 = vld [vmem:[%s2086_s1 + $0x50] sm:$0xff]   ;;  %s2036_s29 = scalar_lea.hbm %s2091_s6, %s1336_s19 }
  0x28   : > { %s1223_s18 = sshll.u32 %s2101_s17, 3  ;;  %1339 = vmatprep.subr.bf16.mxu0 %v1525_v10  ;;  %v1534_v28 = vld [vmem:[%s2086_s1 + $0x10] sm:$0xff]   ;;  %v1535_v29 = vld [vmem:[%s2086_s1 + $0x48] sm:$0xff]   ;;  %v1537_v31 = vld [vmem:[%s2086_s1 + $0x40] sm:$0xff]   ;;  %v1848_v41 = vadd.s32 128, %v1845_v38  ;;  %s1221_s17 = sshll.u32 %s258_s14, 8 }
  0x29   : > { %s1778_s26 = scalar_lea.vmem %s2085_s0, %s1223_s18  ;;  %v1536_v30 = vld [vmem:[%s2086_s1 + $0x8] sm:$0xff]   ;;  %v1538_v32 = vld [vmem:[%s2086_s1] sm:$0xff]   ;;  %v1539_v33 = vld [vmem:[#allocation2 + $0x38] sm:$0xff]   ;;  %s1969_s18 = scalar_lea.vmem [#allocation5], %s1221_s17 }
  0x2a   : > { %v271_v1 = vld [vmem:[%s1778_s26 + $0x10] sm:$0xff]  ;;  %v269_v2 = vld [vmem:[%s1778_s26] sm:$0xff]  ;;  %v272_v3 = vld [vmem:[%s1778_s26 + $0x18] sm:$0xff]  ;;  %1417 = vmatprep.subr.bf16.mxu1 %v1539_v33  ;;  %s1141_s20 = sshll.u32 %s1969_s18, 4  ;;  %s2045_s25 = scalar_lea.sflag [#allocation4], %s258_s14  ;;  %s2038_s20 = int_to_ptr.vmem [resolvable:$true] %s1141_s20 }
  0x2b   : > { %295 = vperm.xlu1 %1522, %v271_v1   ;;  %289 = vperm.xlu0 %1521, %v269_v2   ;;  %v270_v4 = vld [vmem:[%s1778_s26 + $0x8] sm:$0xff]  ;;  %v273_v6 = vld [vmem:[%s1778_s26 + $0x20] sm:$0xff]  ;;  %v276_v9 = vld [vmem:[%s1778_s26 + $0x38] sm:$0xff]  ;;  %s1597_s9 = scalar_lea.vmem %s2038_s20, 4096  ;;  %s1668_s10 = smov [#allocation5]  }
  0x2c   : > { %v274_v5 = vld [vmem:[%s1778_s26 + $0x28] sm:$0xff]  ;;  %v275_v11 = vld [vmem:[%s1778_s26 + $0x30] sm:$0xff]  ;;  %v277_v15 = vld [vmem:[%s1778_s26 + $0x40] sm:$0xff]  ;;  %1340 = vmatpush3.bf16.msra.mxu0 %v1526_v12  ;;  %1418 = vmatpush3.bf16.msra.mxu1 %v1539_v33  ;;  %p1598_p8 = scmp.ne.s32.totalorder %s2038_s20, %s1597_s9  ;;  %s1601_s11 = sshll.u32 %s1668_s10, 4  ;;  %s1602_s11 = int_to_ptr.vmem [resolvable:$false] %s1601_s11 }
  0x2d   : > { %v278_v14 = vld [vmem:[%s1778_s26 + $0x48] sm:$0xff]  ;;  %1341 = vmatprep.subr.bf16.mxu0 %v1527_v13  ;;  %v280_v18 = vld [vmem:[%s1778_s26 + $0x58] sm:$0xff]  ;;  %v279_v19 = vld [vmem:[%s1778_s26 + $0x50] sm:$0xff]  ;;  %s1603_s12 = scalar_lea.vmem %s1602_s11, 8192  ;;  %p1604_p11 = scmp.lt.s32.totalorder %s2038_s20, %s1602_s11 }
  0x2e   : > { %v282_v22 = vld [vmem:[%s1778_s26 + $0x68] sm:$0xff]  ;;  %v281_v23 = vld [vmem:[%s1778_s26 + $0x60] sm:$0xff]  ;;  %v284_v26 = vld [vmem:[%s1778_s26 + $0x78] sm:$0xff]  ;;  %p1599_p9 = pnand %p1598_p8, %p1744_p5  ;;  %p1605_p12 = scmp.lt.s32.totalorder %s1603_s12, %s1597_s9 }
  0x2f   : > { %298 = vperm.xlu1 %1522, %v272_v3   ;;  %292 = vperm.xlu0 %1521, %v270_v4   ;;  %v283_v27 = vld [vmem:[%s1778_s26 + $0x70] sm:$0xff]  ;;  %v1541_v35 = vld [vmem:[#allocation2 + $0x28] sm:$0xff]   ;;  %v1542_v36 = vld [vmem:[#allocation2 + $0x20] sm:$0xff]  }
  0x30   : > { %1342 = vmatpush3.bf16.msra.mxu0 %v1528_v16  ;;  %v1540_v34 = vld [vmem:[#allocation2 + $0x30] sm:$0xff]   ;;  %v1543_v57 = vld [vmem:[#allocation2 + $0x18] sm:$0xff]   ;;  %v1545_v59 = vld [vmem:[#allocation2 + $0x8] sm:$0xff]   ;;  %p1600_p10 = pneg %p1599_p9  ;;  %p1606_p13 = por %p1605_p12, %p1604_p11 }
  0x31   : > { %1343 = vmatprep.subr.bf16.mxu0 %v1529_v17  ;;  %1419 = vmatprep.subr.bf16.mxu1 %v1540_v34  ;;  %v1544_v58 = vld [vmem:[#allocation2 + $0x10] sm:$0xff]   ;;  %v1546_v60 = vld [vmem:[#allocation2] sm:$0xff]  }
  0x32   : > { %1420 = vmatpush3.bf16.msra.mxu1 %v1540_v34  ;;  %v1547_v61 = vld [vmem:[%s2089_s4 + $0x70] ss:$8 sps:$4 sm:$0xff]   ;;  %v1549_v62 = vld [vmem:[%s2089_s4 + $0x74] ss:$8 sps:$4 sm:$0xff]   ;;  %v1552_v63 = vld [vmem:[%s2089_s4 + $0x64] ss:$8 sps:$4 sm:$0xff]   ;;  %p1607_p0 = pnand %p1606_p13, %p1600_p10 }
  0x33   : > { %304 = vperm.xlu1 %1522, %v274_v5   ;;  %301 = vperm.xlu0 %1521, %v273_v6   ;;  %v1550_v1 = vld [vmem:[%s2089_s4 + $0x60] ss:$8 sps:$4 sm:$0xff]   ;;  %v1555_v2 = vld [vmem:[%s2089_s4 + $0x54] ss:$8 sps:$4 sm:$0xff]   ;;  %v1553_v3 = vld [vmem:[%s2089_s4 + $0x50] ss:$8 sps:$4 sm:$0xff]  }
  0x34   : > { %1344 = vmatpush3.bf16.msra.mxu0 %v1530_v20  ;;  %1421 = vmatprep.subr.bf16.mxu1 %v1541_v35  ;;  %v1558_v4 = vld [vmem:[%s2089_s4 + $0x44] ss:$8 sps:$4 sm:$0xff]   ;;  %v1556_v5 = vld [vmem:[%s2089_s4 + $0x40] ss:$8 sps:$4 sm:$0xff]   ;;  %v1561_v6 = vld [vmem:[%s2089_s4 + $0x34] ss:$8 sps:$4 sm:$0xff]  }
  0x35   : > { %1345 = vmatprep.subr.bf16.mxu0 %v1531_v21  ;;  %v1559_v7 = vld [vmem:[%s2089_s4 + $0x30] ss:$8 sps:$4 sm:$0xff]  }
  0x36   : > { %1422 = vmatpush3.bf16.msra.mxu1 %v1541_v35 }
  0x37   : > { %310 = vperm.xlu1 %1522, %v276_v9   ;;  %307 = vperm.xlu0 %1521, %v275_v11  }
  0x38   : > { %1346 = vmatpush3.bf16.msra.mxu0 %v1532_v24  ;;  %1423 = vmatprep.subr.bf16.mxu1 %v1542_v36 }
  0x39   : > { %1347 = vmatprep.subr.bf16.mxu0 %v1533_v25 }
  0x3a   : > { %1424 = vmatpush3.bf16.msra.mxu1 %v1542_v36 }
  0x3b   : > { %316 = vperm.xlu1 %1522, %v278_v14   ;;  %313 = vperm.xlu0 %1521, %v277_v15  }
  0x3c   : > { %1348 = vmatpush3.bf16.msra.mxu0 %v1534_v28  ;;  %1425 = vmatprep.subr.bf16.mxu1 %v1543_v57 }
  0x3d   : > { %1349 = vmatprep.subr.bf16.mxu0 %v1535_v29 }
  0x3e   : > { %1426 = vmatpush3.bf16.msra.mxu1 %v1543_v57 }
  0x3f   : > { %322 = vperm.xlu1 %1522, %v280_v18   ;;  %319 = vperm.xlu0 %1521, %v279_v19  }
  0x40   : > { %1350 = vmatpush3.bf16.msra.mxu0 %v1536_v30  ;;  %1427 = vmatprep.subr.bf16.mxu1 %v1544_v58 }
  0x41   : > { %1351 = vmatprep.subr.bf16.mxu0 %v1537_v31 }
  0x42   : > { %1428 = vmatpush3.bf16.msra.mxu1 %v1544_v58 }
  0x43   : > { %328 = vperm.xlu1 %1522, %v282_v22   ;;  %325 = vperm.xlu0 %1521, %v281_v23  }
  0x44   : > { %1352 = vmatpush3.bf16.msra.mxu0 %v1538_v32  ;;  %1429 = vmatprep.subr.bf16.mxu1 %v1545_v59 }
  0x45   : > { %981 = vmatprep.subr.bf16.mxu0 %v1549_v62 }
  0x46   : > { %1430 = vmatpush3.bf16.msra.mxu1 %v1545_v59 }
  0x47   : > { %334 = vperm.xlu1 %1522, %v284_v26   ;;  %331 = vperm.xlu0 %1521, %v283_v27  }
  0x48   : > { %1431 = vmatprep.subr.bf16.mxu1 %v1546_v60 }
  0x4a   : > { %1432 = vmatpush3.bf16.msra.mxu1 %v1546_v60 }
  0x4b   : > { %1449 = vmatprep.subr.bf16.mxu1 %v1549_v62 }
  0xa6   : > { %v296_v39 = vpop.permute.xlu1 %295  ;;  %v290_v40 = vpop.permute.xlu0 %289 }
  0xa7   : > { %vm341_vm0 = vcmp.eq.s32.totalorder %v1848_v41, %v296_v39  ;;  %vm336_vm4 = vcmp.eq.s32.totalorder %v1845_v38, %v290_v40  ;;  %vm337_vm7 = vcmp.eq.s32.totalorder %v1848_v41, %v290_v40  ;;  %vm340_vm9 = vcmp.eq.s32.totalorder %v1845_v38, %v296_v39 }
  0xaa   : > { %v299_v42 = vpop.permute.xlu1 %298  ;;  %v293_v43 = vpop.permute.xlu0 %292 }
  0xab   : > { %vm343_vm1 = vcmp.eq.s32.totalorder %v1848_v41, %v299_v42  ;;  %vm338_vm2 = vcmp.eq.s32.totalorder %v1845_v38, %v293_v43  ;;  %vm339_vm3 = vcmp.eq.s32.totalorder %v1848_v41, %v293_v43  ;;  %vm342_vm10 = vcmp.eq.s32.totalorder %v1845_v38, %v299_v42 }
  0xac   : > { %vm1276_vm5 = vmpackc.low %vm343_vm1, %vm341_vm0 }
  0xad   : > { %vm1274_vm6 = vmpackc.low %vm338_vm2, %vm336_vm4 }
  0xae   : > { %vm1272_vm8 = vmpackc.low %vm339_vm3, %vm337_vm7  ;;  %v305_v45 = vpop.permute.xlu1 %304  ;;  %v302_v46 = vpop.permute.xlu0 %301 }
  0xaf   : > { %1273 = vmatprep.mubr.msk.bf16.mxu0 %vm1272_vm8, %v1667_v44  ;;  %vm347_vm11 = vcmp.eq.s32.totalorder %v1848_v41, %v305_v45  ;;  %vm345_vm12 = vcmp.eq.s32.totalorder %v1848_v41, %v302_v46  ;;  %vm1278_vm13 = vmpackc.low %vm342_vm10, %vm340_vm9  ;;  %vm346_vm15 = vcmp.eq.s32.totalorder %v1845_v38, %v305_v45  ;;  %vm344_vm0 = vcmp.eq.s32.totalorder %v1845_v38, %v302_v46 }
  0xb0   : > { %1275 = vmatmul.mubr.msk.bf16.vlgmr.msra.gmra.mxu0 %vm1274_vm6, %v1667_v44  ;;  %vm1280_vm14 = vmpackc.low %vm347_vm11, %vm345_vm12 }
  0xb1   : > { %1277 = vmatprep.mubr.msk.bf16.mxu0 %vm1276_vm5, %v1667_v44  ;;  %vm1282_vm3 = vmpackc.low %vm346_vm15, %vm344_vm0  ;;  %982 = vmatpush1.bf16.msra.mxu0 %v1547_v61 }
  0xb2   : > { %v311_v47 = vpop.permute.xlu1 %310  ;;  %v308_v48 = vpop.permute.xlu0 %307  ;;  %983 = vmatprep.subr.bf16.mxu0 %v1552_v63 }
  0xb3   : > { %vm351_vm1 = vcmp.eq.s32.totalorder %v1848_v41, %v311_v47  ;;  %vm349_vm2 = vcmp.eq.s32.totalorder %v1848_v41, %v308_v48  ;;  %vm350_vm5 = vcmp.eq.s32.totalorder %v1845_v38, %v311_v47  ;;  %vm348_vm6 = vcmp.eq.s32.totalorder %v1845_v38, %v308_v48 }
  0xb4   : > { %vm1284_vm4 = vmpackc.low %vm351_vm1, %vm349_vm2 }
  0xb5   : > { %vm1286_vm9 = vmpackc.low %vm350_vm5, %vm348_vm6  ;;  %984 = vmatpush1.bf16.msra.mxu0 %v1550_v1 }
  0xb6   : > { %v317_v49 = vpop.permute.xlu1 %316  ;;  %v314_v50 = vpop.permute.xlu0 %313  ;;  %985 = vmatprep.subr.bf16.mxu0 %v1555_v2 }
  0xb7   : > { %vm355_vm7 = vcmp.eq.s32.totalorder %v1848_v41, %v317_v49  ;;  %vm353_vm8 = vcmp.eq.s32.totalorder %v1848_v41, %v314_v50  ;;  %vm354_vm11 = vcmp.eq.s32.totalorder %v1845_v38, %v317_v49  ;;  %vm352_vm12 = vcmp.eq.s32.totalorder %v1845_v38, %v314_v50 }
  0xb8   : > { %1279 = vmatmul.mubr.msk.bf16.gmra.mxu0 %vm1278_vm13, %v1667_v44  ;;  %vm1288_vm10 = vmpackc.low %vm355_vm7, %vm353_vm8 }
  0xb9   : > { %1281 = vmatprep.mubr.msk.bf16.mxu0 %vm1280_vm14, %v1667_v44  ;;  %vm1290_vm15 = vmpackc.low %vm354_vm11, %vm352_vm12  ;;  %986 = vmatpush1.bf16.msra.mxu0 %v1553_v3 }
  0xba   : > { %v323_v51 = vpop.permute.xlu1 %322  ;;  %v320_v52 = vpop.permute.xlu0 %319  ;;  %987 = vmatprep.subr.bf16.mxu0 %v1558_v4 }
  0xbb   : > { %vm359_vm13 = vcmp.eq.s32.totalorder %v1848_v41, %v323_v51  ;;  %vm357_vm14 = vcmp.eq.s32.totalorder %v1848_v41, %v320_v52  ;;  %vm358_vm1 = vcmp.eq.s32.totalorder %v1845_v38, %v323_v51  ;;  %vm356_vm2 = vcmp.eq.s32.totalorder %v1845_v38, %v320_v52 }
  0xbc   : > { %vm1292_vm0 = vmpackc.low %vm359_vm13, %vm357_vm14 }
  0xbd   : > { %vm1294_vm5 = vmpackc.low %vm358_vm1, %vm356_vm2  ;;  %988 = vmatpush1.bf16.msra.mxu0 %v1556_v5 }
  0xbe   : > { %v329_v53 = vpop.permute.xlu1 %328  ;;  %v326_v54 = vpop.permute.xlu0 %325  ;;  %989 = vmatprep.subr.bf16.mxu0 %v1561_v6 }
  0xbf   : > { %vm362_vm7 = vcmp.eq.s32.totalorder %v1845_v38, %v329_v53  ;;  %vm360_vm8 = vcmp.eq.s32.totalorder %v1845_v38, %v326_v54 }
  0xc0   : > { %1283 = vmatmul.mubr.msk.bf16.gmra.mxu0 %vm1282_vm3, %v1667_v44  ;;  %vm363_vm3 = vcmp.eq.s32.totalorder %v1848_v41, %v329_v53  ;;  %vm1298_vm11 = vmpackc.low %vm362_vm7, %vm360_vm8 }
  0xc1   : > { %1285 = vmatprep.mubr.msk.bf16.mxu0 %vm1284_vm4, %v1667_v44  ;;  %vm361_vm4 = vcmp.eq.s32.totalorder %v1848_v41, %v326_v54  ;;  %990 = vmatpush1.bf16.msra.mxu0 %v1559_v7 }
  0xc2   : > { %vm1296_vm6 = vmpackc.low %vm363_vm3, %vm361_vm4  ;;  %v335_v55 = vpop.permute.xlu1 %334  ;;  %v332_v56 = vpop.permute.xlu0 %331 }
  0xc3   : > { %vm366_vm13 = vcmp.eq.s32.totalorder %v1845_v38, %v335_v55  ;;  %vm364_vm14 = vcmp.eq.s32.totalorder %v1845_v38, %v332_v56 }
  0xc8   : > { %1287 = vmatmul.mubr.msk.bf16.gmra.mxu0 %vm1286_vm9, %v1667_v44  ;;  %vm367_vm9 = vcmp.eq.s32.totalorder %v1848_v41, %v335_v55 }
  0xc9   : > { %1289 = vmatprep.mubr.msk.bf16.mxu0 %vm1288_vm10, %v1667_v44  ;;  %vm365_vm10 = vcmp.eq.s32.totalorder %v1848_v41, %v332_v56 }
  0xca   : > { %vm1300_vm12 = vmpackc.low %vm367_vm9, %vm365_vm10 }
  0xd0   : > { %1291 = vmatmul.mubr.msk.bf16.gmra.mxu0 %vm1290_vm15, %v1667_v44  ;;  %vm1302_vm15 = vmpackc.low %vm366_vm13, %vm364_vm14 }
  0xd1   : > { %1293 = vmatprep.mubr.msk.bf16.mxu0 %vm1292_vm0, %v1667_v44 }
  0xd8   : > { %1295 = vmatmul.mubr.msk.bf16.gmra.mxu0 %vm1294_vm5, %v1667_v44 }
  0xd9   : > { %1297 = vmatprep.mubr.msk.bf16.mxu0 %vm1296_vm6, %v1667_v44 }
  0xe0   : > { %1299 = vmatmul.mubr.msk.bf16.gmra.mxu0 %vm1298_vm11, %v1667_v44 }
  0xe1   : > { %1301 = vmatprep.mubr.msk.bf16.mxu0 %vm1300_vm12, %v1667_v44 }
  0xe8   : > { %1303 = vmatmul.mubr.msk.bf16.gmra.mxu0 %vm1302_vm15, %v1667_v44 }
  0xe9   : > { %1013 = vmatprep.mubr.bf16.mxu0 %v1666_v0 }
 0x170   : > { %v1353_v8 = vpop.f32.mrf.mxu0 }
 0x172   : > { %v1354_v9 = vpop.f32.mrf.mxu0 }
 0x173   : > { %v1355_v12 = vadd.f32 %v1354_v9, %v1353_v8 }
 0x174   : > { %v1356_v10 = vpop.f32.mrf.mxu0 }
 0x176   : > { %v1357_v11 = vpop.f32.mrf.mxu0 }
 0x177   : > { %v1358_v13 = vadd.f32 %v1357_v11, %v1356_v10  ;;  %v1304_v10 = vld [vmem:[%s2088_s3] ss:$0 sm:$0xff] }
 0x178   : > { %v1359_v14 = vpop.f32.mrf.mxu0 }
 0x179   : > { %v673_v15 = vpack.c.bf16 %v1358_v13, %v1355_v12 }
 0x17a   : > { %v1360_v16 = vpop.f32.mrf.mxu0 }
 0x17b   : > { %1433 = vmatprep.mubr.bf16.mxu1 %v673_v15  ;;  %v1361_v19 = vadd.f32 %v1360_v16, %v1359_v14 }
 0x17c   : > { %v1362_v17 = vpop.f32.mrf.mxu0 }
 0x17e   : > { %v1363_v18 = vpop.f32.mrf.mxu0 }
 0x17f   : > { %v1364_v20 = vadd.f32 %v1363_v18, %v1362_v17 }
 0x180   : > { %v1365_v21 = vpop.f32.mrf.mxu0 }
 0x181   : > { %v674_v22 = vpack.c.bf16 %v1364_v20, %v1361_v19 }
 0x182   : > { %v1366_v23 = vpop.f32.mrf.mxu0 }
 0x183   : > { %1434 = vmatmul.mubr.bf16.vlgmr.msra.gmra.mxu1 %v674_v22  ;;  %v1367_v26 = vadd.f32 %v1366_v23, %v1365_v21 }
 0x184   : > { %v1368_v24 = vpop.f32.mrf.mxu0  ;;  %1457 = vmatpush1.bf16.msra.mxu1 %v1547_v61 }
 0x185   : > { %1450 = vmatprep.subr.bf16.mxu1 %v1552_v63 }
 0x186   : > { %v1369_v25 = vpop.f32.mrf.mxu0 }
 0x187   : > { %v1370_v27 = vadd.f32 %v1369_v25, %v1368_v24 }
 0x188   : > { %v1371_v28 = vpop.f32.mrf.mxu0  ;;  %1458 = vmatpush1.bf16.msra.mxu1 %v1550_v1 }
 0x189   : > { %v675_v29 = vpack.c.bf16 %v1370_v27, %v1367_v26  ;;  %1451 = vmatprep.subr.bf16.mxu1 %v1555_v2  ;;  %v1564_v2 = vld [vmem:[%s2089_s4 + $0x24] ss:$8 sps:$4 sm:$0xff]  }
 0x18a   : > { %v1372_v30 = vpop.f32.mrf.mxu0  ;;  %991 = vmatprep.subr.bf16.mxu0 %v1564_v2 }
 0x18b   : > { %1437 = vmatprep.mubr.bf16.mxu1 %v675_v29  ;;  %v1373_v33 = vadd.f32 %v1372_v30, %v1371_v28 }
 0x18c   : > { %v1374_v31 = vpop.f32.mrf.mxu0  ;;  %1459 = vmatpush1.bf16.msra.mxu1 %v1553_v3  ;;  %v1562_v3 = vld [vmem:[%s2089_s4 + $0x20] ss:$8 sps:$4 sm:$0xff]  }
 0x18d   : > { %1452 = vmatprep.subr.bf16.mxu1 %v1558_v4  ;;  %992 = vmatpush1.bf16.msra.mxu0 %v1562_v3  ;;  %v1567_v4 = vld [vmem:[%s2089_s4 + $0x14] ss:$8 sps:$4 sm:$0xff]  }
 0x18e   : > { %v1375_v32 = vpop.f32.mrf.mxu0  ;;  %993 = vmatprep.subr.bf16.mxu0 %v1567_v4 }
 0x18f   : > { %v1376_v34 = vadd.f32 %v1375_v32, %v1374_v31 }
 0x190   : > { %v1377_v35 = vpop.f32.mrf.mxu0  ;;  %1460 = vmatpush1.bf16.msra.mxu1 %v1556_v5  ;;  %v1565_v5 = vld [vmem:[%s2089_s4 + $0x10] ss:$8 sps:$4 sm:$0xff]  }
 0x191   : > { %v676_v36 = vpack.c.bf16 %v1376_v34, %v1373_v33  ;;  %1453 = vmatprep.subr.bf16.mxu1 %v1561_v6  ;;  %994 = vmatpush1.bf16.msra.mxu0 %v1565_v5  ;;  %v1570_v6 = vld [vmem:[%s2089_s4 + $0x4] ss:$8 sps:$4 sm:$0xff]  }
 0x192   : > { %v1378_v38 = vpop.f32.mrf.mxu0  ;;  %995 = vmatprep.subr.bf16.mxu0 %v1570_v6 }
 0x193   : > { %1438 = vmatmul.mubr.bf16.gmra.mxu1 %v676_v36  ;;  %v1379_v41 = vadd.f32 %v1378_v38, %v1377_v35 }
 0x194   : > { %v1380_v39 = vpop.f32.mrf.mxu0  ;;  %1461 = vmatpush1.bf16.msra.mxu1 %v1559_v7  ;;  %v1568_v7 = vld [vmem:[%s2089_s4] ss:$8 sps:$4 sm:$0xff]  }
 0x195   : > { %1454 = vmatprep.subr.bf16.mxu1 %v1564_v2  ;;  %996 = vmatpush1.bf16.msra.mxu0 %v1568_v7 }
 0x196   : > { %v1381_v40 = vpop.f32.mrf.mxu0 }
 0x197   : > { %v1382_v42 = vadd.f32 %v1381_v40, %v1380_v39 }
 0x198   : > { %v1383_v43 = vpop.f32.mrf.mxu0  ;;  %1462 = vmatpush1.bf16.msra.mxu1 %v1562_v3  ;;  %v892_v3 = vshrl.u32 %v285_v37, 7 }
 0x199   : > { %v677_v44 = vpack.c.bf16 %v1382_v42, %v1379_v41  ;;  %1455 = vmatprep.subr.bf16.mxu1 %v1567_v4 }
 0x19a   : > { %v1384_v45 = vpop.f32.mrf.mxu0  ;;  %v893_v4 = vsub.s32 0, %v892_v3 }
 0x19b   : > { %1441 = vmatprep.mubr.bf16.mxu1 %v677_v44  ;;  %v1385_v48 = vadd.f32 %v1384_v45, %v1383_v43 }
 0x19c   : > { %v1386_v46 = vpop.f32.mrf.mxu0  ;;  %1463 = vmatpush1.bf16.msra.mxu1 %v1565_v5  ;;  %v889_v5 = vld [vmem:[%s2090_s5] sm:$0x3] }
 0x19d   : > { %1456 = vmatprep.subr.bf16.mxu1 %v1570_v6  ;;  %v897_v6 = vsub.s32 1, %v892_v3 }
 0x19e   : > { %v1387_v47 = vpop.f32.mrf.mxu0 }
 0x19f   : > { %v1388_v49 = vadd.f32 %v1387_v47, %v1386_v46 }
 0x1a0   : > { %v1389_v50 = vpop.f32.mrf.mxu0  ;;  %1464 = vmatpush1.bf16.msra.mxu1 %v1568_v7  ;;  %v1964_v7 = vrot.slane %v889_v5, %v893_v4 }
 0x1a1   : > { %v678_v51 = vpack.c.bf16 %v1388_v49, %v1385_v48 }
 0x1a2   : > { %v1390_v52 = vpop.f32.mrf.mxu0 }
 0x1a3   : > { %1442 = vmatmul.mubr.bf16.gmra.mxu1 %v678_v51  ;;  %v1391_v55 = vadd.f32 %v1390_v52, %v1389_v50 }
 0x1a4   : > { %v1392_v53 = vpop.f32.mrf.mxu0 }
 0x1a6   : > { %v1393_v54 = vpop.f32.mrf.mxu0 }
 0x1a7   : > { %v1394_v56 = vadd.f32 %v1393_v54, %v1392_v53 }
 0x1a8   : > { %v1395_v57 = vpop.f32.mrf.mxu0 }
 0x1a9   : > { %v679_v58 = vpack.c.bf16 %v1394_v56, %v1391_v55 }
 0x1aa   : > { %v1396_v59 = vpop.f32.mrf.mxu0 }
 0x1ab   : > { %1445 = vmatprep.mubr.bf16.mxu1 %v679_v58  ;;  %v1397_v62 = vadd.f32 %v1396_v59, %v1395_v57 }
 0x1ac   : > { %v1398_v60 = vpop.f32.mrf.mxu0 }
 0x1ae   : > { %v1399_v61 = vpop.f32.mrf.mxu0 }
 0x1af   : > { %v1400_v63 = vadd.f32 %v1399_v61, %v1398_v60 }
 0x1b1   : > { %v680_v1 = vpack.c.bf16 %v1400_v63, %v1397_v62 }
 0x1b3   : > { %1446 = vmatmul.mubr.bf16.gmra.mxu1 %v680_v1 }
 0x1b4   : > { %1033 = vmatprep.mubr.bf16.mxu1 %v1666_v0 }
 0x243   : > { %v1435_v8 = vpop.f32.mrf.mxu1 }
 0x244   : > { %v795_v19 = vadd.f32 %v1435_v8, %v1304_v10  ;;  %v1966_v8 = vrot.slane %v889_v5, %v897_v6 }
 0x245   : > { %v786_v9 = vpop.f32.mrf.mxu1 }
 0x246   : > { %v787_v12 = vadd.f32 %v1304_v10, %v786_v9  ;;  %v851_v22 = vmax.f32 %v795_v19, 0.0 }
 0x247   : > { %v1436_v11 = vpop.f32.mrf.mxu1 }
 0x248   : > { %v849_v15 = vmax.f32 %v787_v12, 0.0  ;;  %v798_v17 = vadd.f32 %v1436_v11, %v1304_v10 }
 0x249   : > { %v789_v13 = vpop.f32.mrf.mxu1 }
 0x24a   : > { %v790_v14 = vadd.f32 %v1304_v10, %v789_v13  ;;  %v852_v20 = vmax.f32 %v798_v17, 0.0 }
 0x24c   : > { %v850_v16 = vmax.f32 %v790_v14, 0.0  ;;  %v866_v24 = vpack.c.bf16 %v852_v20, %v851_v22 }
 0x24e   : > { %v865_v18 = vpack.c.bf16 %v850_v16, %v849_v15 }
 0x250   : > { %1014 = vmatmul.mubr.bf16.vlgmr.msra.gmra.mxu0 %v865_v18 }
 0x251   : > { %1023 = vmatprep.mubr.bf16.mxu0 %v1666_v0 }
 0x253   : > { %v1439_v21 = vpop.f32.mrf.mxu1 }
 0x254   : > { %v811_v33 = vadd.f32 %v1439_v21, %v1304_v10 }
 0x255   : > { %v802_v23 = vpop.f32.mrf.mxu1 }
 0x256   : > { %v803_v26 = vadd.f32 %v1304_v10, %v802_v23  ;;  %v855_v36 = vmax.f32 %v811_v33, 0.0 }
 0x257   : > { %v1440_v25 = vpop.f32.mrf.mxu1 }
 0x258   : > { %1024 = vmatmul.mubr.bf16.gmra.mxu0 %v866_v24  ;;  %v853_v29 = vmax.f32 %v803_v26, 0.0  ;;  %v814_v31 = vadd.f32 %v1440_v25, %v1304_v10 }
 0x259   : > { %v805_v27 = vpop.f32.mrf.mxu1 }
 0x25a   : > { %v806_v28 = vadd.f32 %v1304_v10, %v805_v27  ;;  %v856_v34 = vmax.f32 %v814_v31, 0.0 }
 0x25c   : > { %v854_v30 = vmax.f32 %v806_v28, 0.0  ;;  %v868_v39 = vpack.c.bf16 %v856_v34, %v855_v36 }
 0x25e   : > { %v867_v32 = vpack.c.bf16 %v854_v30, %v853_v29 }
 0x260   : > { %1034 = vmatmul.mubr.bf16.vlgmr.msra.gmra.mxu1 %v867_v32 }
 0x261   : > { %1043 = vmatprep.mubr.bf16.mxu1 %v1666_v0 }
 0x263   : > { %v1443_v35 = vpop.f32.mrf.mxu1 }
 0x264   : > { %v827_v48 = vadd.f32 %v1443_v35, %v1304_v10 }
 0x265   : > { %v818_v38 = vpop.f32.mrf.mxu1 }
 0x266   : > { %v819_v41 = vadd.f32 %v1304_v10, %v818_v38  ;;  %v859_v51 = vmax.f32 %v827_v48, 0.0 }
 0x267   : > { %v1444_v40 = vpop.f32.mrf.mxu1 }
 0x268   : > { %1044 = vmatmul.mubr.bf16.gmra.mxu1 %v868_v39  ;;  %v857_v44 = vmax.f32 %v819_v41, 0.0  ;;  %v830_v46 = vadd.f32 %v1444_v40, %v1304_v10 }
 0x269   : > { %v821_v42 = vpop.f32.mrf.mxu1  ;;  %1053 = vmatprep.mubr.bf16.mxu1 %v1666_v0 }
 0x26a   : > { %v822_v43 = vadd.f32 %v1304_v10, %v821_v42  ;;  %v860_v49 = vmax.f32 %v830_v46, 0.0 }
 0x26c   : > { %v858_v45 = vmax.f32 %v822_v43, 0.0  ;;  %v870_v53 = vpack.c.bf16 %v860_v49, %v859_v51 }
 0x26e   : > { %v869_v47 = vpack.c.bf16 %v858_v45, %v857_v44 }
 0x270   : > { %1054 = vmatmul.mubr.bf16.gmra.mxu1 %v869_v47 }
 0x271   : > { %1063 = vmatprep.mubr.bf16.mxu1 %v1666_v0 }
 0x273   : > { %v1447_v50 = vpop.f32.mrf.mxu1 }
 0x274   : > { %v843_v62 = vadd.f32 %v1447_v50, %v1304_v10 }
 0x275   : > { %v834_v52 = vpop.f32.mrf.mxu1 }
 0x276   : > { %v835_v55 = vadd.f32 %v1304_v10, %v834_v52  ;;  %v863_v1 = vmax.f32 %v843_v62, 0.0 }
 0x277   : > { %v1448_v54 = vpop.f32.mrf.mxu1 }
 0x278   : > { %1064 = vmatmul.mubr.bf16.gmra.mxu1 %v870_v53  ;;  %v861_v58 = vmax.f32 %v835_v55, 0.0  ;;  %v846_v60 = vadd.f32 %v1448_v54, %v1304_v10 }
 0x279   : > { %v837_v56 = vpop.f32.mrf.mxu1  ;;  %1073 = vmatprep.mubr.bf16.mxu1 %v1666_v0 }
 0x27a   : > { %v838_v57 = vadd.f32 %v1304_v10, %v837_v56  ;;  %v864_v63 = vmax.f32 %v846_v60, 0.0 }
 0x27c   : > { %v862_v59 = vmax.f32 %v838_v57, 0.0  ;;  %v872_v2 = vpack.c.bf16 %v864_v63, %v863_v1 }
 0x27e   : > { %v871_v61 = vpack.c.bf16 %v862_v59, %v861_v58 }
 0x280   : > { %1074 = vmatmul.mubr.bf16.gmra.mxu1 %v871_v61 }
 0x281   : > { %1083 = vmatprep.mubr.bf16.mxu1 %v1666_v0 }
 0x288   : > { %1084 = vmatmul.mubr.bf16.gmra.mxu1 %v872_v2 }
 0x310   : > { %v1015_v0 = vpop.f32.mrf.mxu0 }
 0x311   : > { %v1016_v9 = vadd.f32 %v1015_v0, %v1964_v7 }
 0x312   : > { %v1017_v10 = vpop.f32.mrf.mxu0 }
 0x313   : > { %1094 = vst [vmem:[%s1969_s18] sm:$0xff] %v1016_v9  ;;  %v1018_v37 = vadd.f32 %v1017_v10, %v1966_v8 }
 0x314   : > { %v1019_v11 = vpop.f32.mrf.mxu0 }
 0x315   : > { %1095 = vst [vmem:[%s1969_s18 + $0x8] sm:$0xff] %v1018_v37  ;;  %v1020_v12 = vadd.f32 %v1019_v11, %v1964_v7 }
 0x316   : > { %v1021_v13 = vpop.f32.mrf.mxu0 }
 0x317   : > { %1096 = vst [vmem:[%s1969_s18 + $0x10] sm:$0xff] %v1020_v12  ;;  %v1022_v14 = vadd.f32 %v1021_v13, %v1966_v8 }
 0x318   : > { %v1025_v15 = vpop.f32.mrf.mxu0 }
 0x319   : > { %1097 = vst [vmem:[%s1969_s18 + $0x18] sm:$0xff] %v1022_v14  ;;  %v1026_v16 = vadd.f32 %v1025_v15, %v1964_v7 }
 0x31a   : > { %v1027_v17 = vpop.f32.mrf.mxu0 }
 0x31b   : > { %1098 = vst [vmem:[%s1969_s18 + $0x20] sm:$0xff] %v1026_v16  ;;  %v1028_v18 = vadd.f32 %v1027_v17, %v1966_v8 }
 0x31c   : > { %v1029_v19 = vpop.f32.mrf.mxu0 }
 0x31d   : > { %1099 = vst [vmem:[%s1969_s18 + $0x28] sm:$0xff] %v1028_v18  ;;  %v1030_v20 = vadd.f32 %v1029_v19, %v1964_v7 }
 0x31e   : > { %v1031_v21 = vpop.f32.mrf.mxu0 }
 0x31f   : > { %1100 = vst [vmem:[%s1969_s18 + $0x30] sm:$0xff] %v1030_v20  ;;  %v1032_v22 = vadd.f32 %v1031_v21, %v1966_v8 }
 0x320   : > { %v1035_v23 = vpop.f32.mrf.mxu1 }
 0x321   : > { %1101 = vst [vmem:[%s1969_s18 + $0x38] sm:$0xff] %v1032_v22  ;;  %v1036_v24 = vadd.f32 %v1035_v23, %v1964_v7 }
 0x322   : > { %v1037_v25 = vpop.f32.mrf.mxu1 }
 0x323   : > { %1102 = vst [vmem:[%s1969_s18 + $0x40] sm:$0xff] %v1036_v24  ;;  %v1038_v26 = vadd.f32 %v1037_v25, %v1966_v8 }
 0x324   : > { %v1039_v27 = vpop.f32.mrf.mxu1 }
 0x325   : > { %1103 = vst [vmem:[%s1969_s18 + $0x48] sm:$0xff] %v1038_v26  ;;  %v1040_v28 = vadd.f32 %v1039_v27, %v1964_v7 }
 0x326   : > { %v1041_v29 = vpop.f32.mrf.mxu1 }
 0x327   : > { %1104 = vst [vmem:[%s1969_s18 + $0x50] sm:$0xff] %v1040_v28  ;;  %v1042_v30 = vadd.f32 %v1041_v29, %v1966_v8 }
 0x328   : > { %v1045_v31 = vpop.f32.mrf.mxu1 }
 0x329   : > { %1105 = vst [vmem:[%s1969_s18 + $0x58] sm:$0xff] %v1042_v30  ;;  %v1046_v32 = vadd.f32 %v1045_v31, %v1964_v7 }
 0x32a   : > { %v1047_v33 = vpop.f32.mrf.mxu1 }
 0x32b   : > { %1106 = vst [vmem:[%s1969_s18 + $0x60] sm:$0xff] %v1046_v32  ;;  %v1048_v34 = vadd.f32 %v1047_v33, %v1966_v8 }
 0x32c   : > { %v1049_v35 = vpop.f32.mrf.mxu1 }
 0x32d   : > { %1107 = vst [vmem:[%s1969_s18 + $0x68] sm:$0xff] %v1048_v34  ;;  %v1050_v36 = vadd.f32 %v1049_v35, %v1964_v7 }
 0x32e   : > { %v1051_v38 = vpop.f32.mrf.mxu1 }
 0x32f   : > { %1108 = vst [vmem:[%s1969_s18 + $0x70] sm:$0xff] %v1050_v36  ;;  %v1052_v39 = vadd.f32 %v1051_v38, %v1966_v8 }
 0x330   : > { %v1055_v40 = vpop.f32.mrf.mxu1 }
 0x331   : > { %1109 = vst [vmem:[%s1969_s18 + $0x78] sm:$0xff] %v1052_v39  ;;  %v1056_v41 = vadd.f32 %v1055_v40, %v1964_v7 }
 0x332   : > { %v1057_v42 = vpop.f32.mrf.mxu1 }
 0x333   : > { %1110 = vst [vmem:[%s1969_s18 + $0x80] sm:$0xff] %v1056_v41  ;;  %v1058_v43 = vadd.f32 %v1057_v42, %v1966_v8 }
 0x334   : > { %v1059_v44 = vpop.f32.mrf.mxu1 }
 0x335   : > { %1111 = vst [vmem:[%s1969_s18 + $0x88] sm:$0xff] %v1058_v43  ;;  %v1060_v45 = vadd.f32 %v1059_v44, %v1964_v7 }
 0x336   : > { %v1061_v46 = vpop.f32.mrf.mxu1 }
 0x337   : > { %1112 = vst [vmem:[%s1969_s18 + $0x90] sm:$0xff] %v1060_v45  ;;  %v1062_v47 = vadd.f32 %v1061_v46, %v1966_v8 }
 0x338   : > { %v1065_v48 = vpop.f32.mrf.mxu1 }
 0x339   : > { %1113 = vst [vmem:[%s1969_s18 + $0x98] sm:$0xff] %v1062_v47  ;;  %v1066_v49 = vadd.f32 %v1065_v48, %v1964_v7 }
 0x33a   : > { %v1067_v50 = vpop.f32.mrf.mxu1 }
 0x33b   : > { %1114 = vst [vmem:[%s1969_s18 + $0xa0] sm:$0xff] %v1066_v49  ;;  %v1068_v51 = vadd.f32 %v1067_v50, %v1966_v8 }
 0x33c   : > { %v1069_v52 = vpop.f32.mrf.mxu1 }
 0x33d   : > { %1115 = vst [vmem:[%s1969_s18 + $0xa8] sm:$0xff] %v1068_v51  ;;  %v1070_v53 = vadd.f32 %v1069_v52, %v1964_v7 }
 0x33e   : > { %v1071_v54 = vpop.f32.mrf.mxu1 }
 0x33f   : > { %1116 = vst [vmem:[%s1969_s18 + $0xb0] sm:$0xff] %v1070_v53  ;;  %v1072_v55 = vadd.f32 %v1071_v54, %v1966_v8 }
 0x340   : > { %v1075_v56 = vpop.f32.mrf.mxu1 }
 0x341   : > { %1117 = vst [vmem:[%s1969_s18 + $0xb8] sm:$0xff] %v1072_v55  ;;  %v1076_v57 = vadd.f32 %v1075_v56, %v1964_v7 }
 0x342   : > { %v1077_v58 = vpop.f32.mrf.mxu1 }
 0x343   : > { %1118 = vst [vmem:[%s1969_s18 + $0xc0] sm:$0xff] %v1076_v57  ;;  %v1078_v59 = vadd.f32 %v1077_v58, %v1966_v8 }
 0x344   : > { %v1079_v60 = vpop.f32.mrf.mxu1 }
 0x345   : > { %1119 = vst [vmem:[%s1969_s18 + $0xc8] sm:$0xff] %v1078_v59  ;;  %v1080_v61 = vadd.f32 %v1079_v60, %v1964_v7 }
 0x346   : > { %v1081_v62 = vpop.f32.mrf.mxu1 }
 0x347   : > { %1120 = vst [vmem:[%s1969_s18 + $0xd0] sm:$0xff] %v1080_v61  ;;  %v1082_v63 = vadd.f32 %v1081_v62, %v1966_v8 }
 0x348   : > { %v1085_v1 = vpop.f32.mrf.mxu1 }
 0x349   : > { %1121 = vst [vmem:[%s1969_s18 + $0xd8] sm:$0xff] %v1082_v63  ;;  %v1086_v2 = vadd.f32 %v1085_v1, %v1964_v7 }
 0x34a   : > { %v1087_v3 = vpop.f32.mrf.mxu1 }
 0x34b   : > { %1122 = vst [vmem:[%s1969_s18 + $0xe0] sm:$0xff] %v1086_v2  ;;  %v1088_v4 = vadd.f32 %v1087_v3, %v1966_v8 }
 0x34c   : > { %v1089_v5 = vpop.f32.mrf.mxu1 }
 0x34d   : > { %1123 = vst [vmem:[%s1969_s18 + $0xe8] sm:$0xff] %v1088_v4  ;;  %v1090_v6 = vadd.f32 %v1089_v5, %v1964_v7 }
 0x34e   : > { %v1091_v0 = vpop.f32.mrf.mxu1 }
 0x34f   : > { %1124 = vst [vmem:[%s1969_s18 + $0xf0] sm:$0xff] %v1090_v6  ;;  %v1092_v9 = vadd.f32 %v1091_v0, %v1966_v8 }
 0x351   : > { %1125 = vst [vmem:[%s1969_s18 + $0xf8] sm:$0xff] %v1092_v9 }
 0x352   : > { %1610 = shalt.err (!%p1607_p0)
}
 0x353   : > { %s1611_s13 = scalar_lea.hbm %s2036_s29, 4096  ;;  %s1615_s16 = scalar_lea.hbm %s2091_s6, 8192 }
 0x354   : > { %p1612_p1 = scmp.ne.s32.totalorder %s2036_s29, %s1611_s13  ;;  %p1616_p4 = scmp.lt.s32.totalorder %s2036_s29, %s2091_s6 }
 0x355   : > { %p1617_p7 = scmp.lt.s32.totalorder %s1615_s16, %s1611_s13 }
 0x356   : > { %p1613_p2 = pnand %p1612_p1, %p1744_p5 }
 0x357   : > { %p1618_p6 = por %p1617_p7, %p1616_p4 }
 0x358   : > { %p1614_p3 = pneg %p1613_p2 }
 0x35a   : > { %p1619_p8 = pnand %p1618_p6, %p1614_p3 }
 0x35c   : > { %1622 = shalt.err (!%p1619_p8)
}
 0x35d   : > { %s1669_s19 = smov 256   ;;  %s1670_s28 = smov 16  }
 0x35e   : > { %1469 = dma.vmem_to_hbm [thread:$0]  (%p1744_p5), %s2038_s20, 4096, %s2036_s29, %s2045_s25, %s1669_s19, %s1669_s19, %s1670_s28  }
 0x35f PF: > { %p1481_p9 = scmp.ge.s32.totalorder %s1661_s24, 2  ;;  %s1156_s26 = sand.u32 1, %s1649_s21  }
 0x360   : > { %p2095_p10 = scmp.ne.s32.totalorder %s2093_s8, 0  ;;  %s1157_s9 = scalar_lea.sflag [#allocation4], %s1156_s26 }
 0x362   : > { %p1476_p11 = pnand %p1481_p9, %p2095_p10 }
 0x364   : > { %p1477_p12 = pneg %p1476_p11 }
 0x366   : > { %1644 = dma.done.wait (%p1477_p12), %s1157_s9, 4096  }
 0x367   : > { %1646 = vsyncadd (%p1477_p12), %s1157_s9, 4294963200  ;;  %p17_p13 = scmp.ge.s32.totalorder %s1731_s27, 4   ;;  %s2096_s21 = smov %s1653_s22 }
 0x368   : > { %s2097_s22 = smov %s1657_s23  ;;  %s2098_s23 = smov %s1742_s30 }
 0x369   : > { %s2099_s24 = smov %s1731_s27  ;;  %19 = sbr.rel (!%p17_p13) target bundleno = 4 (0x4), region = 84 }
 0x36e   :  { %1162 = vsyncpa [#allocation3], 1 }
 0x36f   :  { %1164 = vsyncpa [#allocation3 + $0x1], 1 }
 0x370   :  { %1165 = vsyncpa [#allocation4], 1 }
 0x371   :  { %1167 = vsyncpa [#allocation4 + $0x1], 1 }

</bundles_post_ra>
